<compile_context>
chip_gen: v5e
topology: v5e:2x2
jax: 0.10.0
libtpu: 0.0.40
codegen_flags: <defaults>
</compile_context>

<pallas_src>
import functools

import jax
import jax.numpy as jnp
from jax import lax
from jax.experimental import pallas as pl
from jax.experimental.pallas import tpu as pltpu


def _round_up(n, m):
    return (n + m - 1) // m * m


def _sublane_multiple(dtype):
    return {4: 8, 2: 16, 1: 32}.get(jnp.dtype(dtype).itemsize, 8)


def _vmem_capacity_bytes():
    try:
        cap = int(getattr(pltpu.get_tpu_info(), "vmem_capacity_bytes", 0))
    except Exception:
        cap = 0
    return cap if cap > 0 else (64 << 20)   # conservative v7x per-core default


# --------------------------------------------------------------------------
# Shared compute: dense -> gelu -> LayerNorm (stats over the REAL width).
# --------------------------------------------------------------------------
def _dense_gelu_ln(x, w1, b1, *, eps, hidden_real, approx_gelu):
    h = jnp.dot(x, w1, preferred_element_type=jnp.float32)
    h = h + b1                                     # (TM,Hp) + (1,Hp)
    if approx_gelu:
        h = jax.nn.gelu(h, approximate=True)       # tanh/exp -> EUP slot
    else:
        # exact gelu: 0.5 * h * (1 + erf(h / sqrt(2))), matches PyTorch
        h = 0.5 * h * (1.0 + lax.erf(h * jnp.float32(0.7071067811865476)))
    # Single-pass LN stats over the real hidden width; padded hidden columns
    # of h are exactly zero (zero-padded x / W1 / b1, gelu(0) = 0).
    inv_h = jnp.float32(1.0 / hidden_real)
    s = jnp.sum(h, axis=-1, keepdims=True)
    sq = jnp.sum(h * h, axis=-1, keepdims=True)
    mean = s * inv_h
    var = jnp.maximum(sq * inv_h - mean * mean, 0.0)
    return (h - mean) * lax.rsqrt(var + jnp.float32(eps))


# --------------------------------------------------------------------------
# Path A kernel: (TM, H_pad) token tile -> (TM, E_pad) logits, W2' resident.
# --------------------------------------------------------------------------
def _tec_head_fused_kernel(x_ref, w1_ref, b1_ref, w2_ref, b2_ref, o_ref, *,
                           eps, hidden_real, approx_gelu):
    w_dtype = w1_ref.dtype
    x = x_ref[...]
    if x.dtype != w_dtype:
        x = x.astype(w_dtype)
    h = _dense_gelu_ln(x, w1_ref[...], b1_ref[...], eps=eps,
                       hidden_real=hidden_real, approx_gelu=approx_gelu)
    out = jnp.dot(h.astype(w_dtype), w2_ref[...],
                  preferred_element_type=jnp.float32)
    o_ref[...] = (out + b2_ref[...]).astype(o_ref.dtype)


# --------------------------------------------------------------------------
# Path B kernel: grid=(M_tiles, E_tiles); dense+gelu+LN cached in VMEM under
# j == 0, decoder tiles of W2' streamed along the inner E axis.
# --------------------------------------------------------------------------
def _tec_head_etiled_kernel(x_ref, w1_ref, b1_ref, w2_ref, b2_ref, o_ref,
                            ln_ref, *, eps, hidden_real, approx_gelu):
    @pl.when(pl.program_id(1) == 0)
    def _():
        w_dtype = w1_ref.dtype
        x = x_ref[...]
        if x.dtype != w_dtype:
            x = x.astype(w_dtype)
        h = _dense_gelu_ln(x, w1_ref[...], b1_ref[...], eps=eps,
                           hidden_real=hidden_real, approx_gelu=approx_gelu)
        ln_ref[...] = h.astype(ln_ref.dtype)

    out = jnp.dot(ln_ref[...], w2_ref[...], preferred_element_type=jnp.float32)
    o_ref[...] = (out + b2_ref[...]).astype(o_ref.dtype)


# --------------------------------------------------------------------------
# One-time parameter prep: transpose to [in, out], fold LN affine into the
# decoder, zero-pad H/E to lane multiples of 128.
# --------------------------------------------------------------------------
def prepare_tec_head_params(params, compute_dtype=jnp.float32):
    H = params["dense_w"].shape[1]
    E = params["dec_w"].shape[0]
    H_pad = _round_up(H, 128)
    E_pad = _round_up(E, 128)

    def pad2(a, rows, cols, dtype):
        a = jnp.asarray(a, dtype)
        return jnp.pad(a, ((0, rows - a.shape[0]), (0, cols - a.shape[1])))

    # Fold LayerNorm affine into the decoder:
    #   (x_hat*gamma + beta) @ W2^T + b2
    #     = x_hat @ (gamma[:,None] * W2^T) + (beta @ W2^T + b2)
    w2_t = jnp.asarray(params["dec_w"], jnp.float32).T           # (H, E)
    gamma = jnp.asarray(params["ln_g"], jnp.float32)
    beta = jnp.asarray(params["ln_b"], jnp.float32)
    w2_t_fold = gamma[:, None] * w2_t
    b2_fold = beta @ w2_t + jnp.asarray(params["dec_b"], jnp.float32)

    return {
        "w1_t": pad2(jnp.asarray(params["dense_w"]).T, H_pad, H_pad,
                     compute_dtype),
        "b1": pad2(jnp.asarray(params["dense_b"]).reshape(1, H), 1, H_pad,
                   jnp.float32),
        # NOTE: rows H..H_pad-1 of w2_t MUST stay exactly zero; they annul the
        # nonzero normalized padding columns of the LN output (the gamma/beta
        # fold removed the explicit zeroing the affine used to provide).
        "w2_t": pad2(w2_t_fold, H_pad, E_pad, compute_dtype),
        "b2": pad2(b2_fold.reshape(1, E), 1, E_pad, jnp.float32),
        "hidden": H,
        "num_out": E,
    }


# --------------------------------------------------------------------------
# VMEM estimators + tile selection.
# --------------------------------------------------------------------------
def _est_fused(tm, H_pad, E_pad, x_bytes, w_bytes, out_bytes, n_w_buf):
    return (2 * tm * H_pad * x_bytes                               # x (2 bufs)
            + 2 * tm * E_pad * out_bytes                           # out (2 bufs)
            + n_w_buf * (H_pad * H_pad + H_pad * E_pad) * w_bytes  # W1^T, W2'^T
            + n_w_buf * (H_pad + E_pad) * 4                        # b1, b2'
            + 5 * tm * H_pad * 4                                   # f32 temps
            + 2 * tm * E_pad * 4)                                  # f32 decoder acc


def _est_etiled(tm, tn, H_pad, x_bytes, w_bytes, out_bytes, n_w_buf):
    return (2 * tm * H_pad * x_bytes
            + n_w_buf * (H_pad * H_pad * w_bytes + H_pad * 4)      # W1^T, b1
            + 2 * (H_pad * tn * w_bytes + tn * 4)                  # W2' tile, b2'
            + 2 * tm * tn * out_bytes
            + tm * H_pad * w_bytes                                 # LN scratch
            + 5 * tm * H_pad * 4
            + 2 * tm * tn * 4)


def _choose_tm(M, sub, budget, est_fn):
    m_cap = _round_up(max(M, 1), sub)
    # Keep >= 2 grid steps over the parallel M axis whenever possible so both
    # v7x TensorCores get work.
    tile_cap = _round_up((m_cap + 1) // 2, sub) if m_cap >= 2 * sub else m_cap
    tm = max(sub, min(1024, tile_cap) // sub * sub)
    while tm > sub and est_fn(tm) > budget:
        if tm % 256 == 0 and tm > 256:
            tm -= 256                      # prefer MXU-friendly 256-multiples
        else:
            tm = max(sub, (tm // 2) // sub * sub)
    return tm


def _choose_tn(E_pad, H_pad, w_bytes, budget):
    for tn in (1024, 512, 256, 128):
        if E_pad % tn == 0 and 2 * H_pad * tn * w_bytes <= budget // 4:
            return tn
    return 128


# --------------------------------------------------------------------------
# Wrapper: [B, S, H] features + prepared params -> [B, S, E]
# --------------------------------------------------------------------------
def lecbert_tec_head(features, prepared, *, eps=1e-12, approximate_gelu=False,
                     force_e_tiles=False):
    B, S, H = features.shape
    assert H == prepared["hidden"]
    E = prepared["num_out"]
    H_pad = prepared["w1_t"].shape[0]
    E_pad = prepared["w2_t"].shape[1]
    M = B * S

    w_dtype = prepared["w1_t"].dtype
    out_dtype = features.dtype

    x2d = features.reshape(M, H)
    # Cast activations outside the kernel on the bf16 path so the x DMA is
    # half-width.
    if jnp.dtype(w_dtype).itemsize < jnp.dtype(x2d.dtype).itemsize:
        x2d = x2d.astype(w_dtype)

    x_bytes = jnp.dtype(x2d.dtype).itemsize
    w_bytes = jnp.dtype(w_dtype).itemsize
    out_bytes = jnp.dtype(out_dtype).itemsize
    sub = max(_sublane_multiple(x2d.dtype), _sublane_multiple(out_dtype))

    cap = _vmem_capacity_bytes()
    budget = int(cap * 0.65)

    # Stream W2' (E-tiled path) when the resident weights would eat more than
    # half the budget (vocab-sized / tied-embedding decoders).
    use_e_tiles = force_e_tiles or (
        (H_pad * H_pad + H_pad * E_pad) * w_bytes > budget // 2)

    kernel_kw = dict(eps=eps, hidden_real=H, approx_gelu=approximate_gelu)

    def _run(single_buffer_consts):
        n_w_buf = 1 if single_buffer_consts else 2
        const_kw = ({"pipeline_mode": pl.Buffered(1)}
                    if single_buffer_consts else {})

        if not use_e_tiles:
            tm = _choose_tm(M, sub, budget, lambda t: _est_fused(
                t, H_pad, E_pad, x_bytes, w_bytes, out_bytes, n_w_buf))
            est = _est_fused(tm, H_pad, E_pad, x_bytes, w_bytes, out_bytes,
                             n_w_buf)
            M_pad = _round_up(M, tm)
            x_in = x2d
            if (M_pad, H_pad) != (M, H):
                x_in = jnp.pad(x_in, ((0, M_pad - M), (0, H_pad - H)))
            return pl.pallas_call(
                functools.partial(_tec_head_fused_kernel, **kernel_kw),
                out_shape=jax.ShapeDtypeStruct((M_pad, E_pad), out_dtype),
                grid_spec=pltpu.PrefetchScalarGridSpec(
                    num_scalar_prefetch=0,
                    grid=(M_pad // tm,),
                    in_specs=[
                        pl.BlockSpec((tm, H_pad), lambda i: (i, 0)),
                        pl.BlockSpec((H_pad, H_pad), lambda i: (0, 0), **const_kw),
                        pl.BlockSpec((1, H_pad), lambda i: (0, 0), **const_kw),
                        pl.BlockSpec((H_pad, E_pad), lambda i: (0, 0), **const_kw),
                        pl.BlockSpec((1, E_pad), lambda i: (0, 0), **const_kw),
                    ],
                    out_specs=pl.BlockSpec((tm, E_pad), lambda i: (i, 0)),
                ),
                compiler_params=pltpu.CompilerParams(
                    dimension_semantics=("parallel",),
                    vmem_limit_bytes=int(min(max(est + (4 << 20), 32 << 20),
                                             int(cap * 0.9))),
                ),
            )(x_in, prepared["w1_t"], prepared["b1"],
              prepared["w2_t"], prepared["b2"])

        # ---- E-tiled path: stream W2' tiles, cache dense+gelu+LN in VMEM ----
        tn = _choose_tn(E_pad, H_pad, w_bytes, budget)
        tm = _choose_tm(M, sub, budget, lambda t: _est_etiled(
            t, tn, H_pad, x_bytes, w_bytes, out_bytes, n_w_buf))
        est = _est_etiled(tm, tn, H_pad, x_bytes, w_bytes, out_bytes, n_w_buf)
        M_pad = _round_up(M, tm)
        x_in = x2d
        if (M_pad, H_pad) != (M, H):
            x_in = jnp.pad(x_in, ((0, M_pad - M), (0, H_pad - H)))
        return pl.pallas_call(
            functools.partial(_tec_head_etiled_kernel, **kernel_kw),
            out_shape=jax.ShapeDtypeStruct((M_pad, E_pad), out_dtype),
            grid_spec=pltpu.PrefetchScalarGridSpec(
                num_scalar_prefetch=0,
                grid=(M_pad // tm, E_pad // tn),
                in_specs=[
                    pl.BlockSpec((tm, H_pad), lambda i, j: (i, 0)),
                    pl.BlockSpec((H_pad, H_pad), lambda i, j: (0, 0), **const_kw),
                    pl.BlockSpec((1, H_pad), lambda i, j: (0, 0), **const_kw),
                    pl.BlockSpec((H_pad, tn), lambda i, j: (0, j)),
                    pl.BlockSpec((1, tn), lambda i, j: (0, j)),
                ],
                out_specs=pl.BlockSpec((tm, tn), lambda i, j: (i, j)),
                scratch_shapes=[pltpu.VMEM((tm, H_pad), w_dtype)],
            ),
            compiler_params=pltpu.CompilerParams(
                dimension_semantics=("parallel", "arbitrary"),
                vmem_limit_bytes=int(min(max(est + (4 << 20), 32 << 20),
                                         int(cap * 0.9))),
            ),
        )(x_in, prepared["w1_t"], prepared["b1"],
          prepared["w2_t"], prepared["b2"])

    try:
        out2d = _run(True)
    except Exception:
        # Fallback for jax builds without BlockSpec(pipeline_mode=Buffered(1)).
        out2d = _run(False)

    return out2d[:M, :E].reshape(B, S, E)


# --------------------------------------------------------------------------
# Pure-JAX reference of the PyTorch forward for a correctness check.
# --------------------------------------------------------------------------
def _reference(features, params, eps=1e-12):
    x = features @ params["dense_w"].T + params["dense_b"]
    x = 0.5 * x * (1.0 + lax.erf(x / jnp.sqrt(2.0)))
    mean = jnp.mean(x, axis=-1, keepdims=True)
    var = jnp.mean((x - mean) ** 2, axis=-1, keepdims=True)
    x = (x - mean) / jnp.sqrt(var + eps)
    x = x * params["ln_g"] + params["ln_b"]
    return x @ params["dec_w"].T + params["dec_b"]


if __name__ == "__main__":
    eps = 1e-12
    key = jax.random.PRNGKey(0)
    ks = jax.random.split(key, 8)

    # Small config consistent with the module: batch=2, seq=8, hidden=32, E=16.
    B, S, H, E = 2, 8, 32, 16
    params = {
        "dense_w": jax.random.normal(ks[0], (H, H), jnp.float32) * 0.05,
        "dense_b": jax.random.normal(ks[1], (H,), jnp.float32) * 0.02,
        "ln_g":    1.0 + 0.1 * jax.random.normal(ks[2], (H,), jnp.float32),
        "ln_b":    0.05 * jax.random.normal(ks[3], (H,), jnp.float32),
        "dec_w":   jax.random.normal(ks[4], (E, H), jnp.float32) * 0.05,
        "dec_b":   jnp.zeros((E,), jnp.float32),   # module init: zeros
    }
    features = jax.random.normal(ks[5], (B, S, H), jnp.float32)

    # Demo keeps f32 to match PyTorch numerics; pass jnp.bfloat16 here for
    # bf16 models to hit the v6e/v7x MXU bf16 peak and halve resident VMEM.
    prepared = prepare_tec_head_params(params, compute_dtype=jnp.float32)

    out = lecbert_tec_head(features, prepared, eps=eps)
    jax.block_until_ready(out)
    ref = _reference(features, params, eps=eps)
    assert out.shape == (B, S, E), out.shape
    assert jnp.allclose(out, ref, atol=1e-4, rtol=1e-4), (
        float(jnp.max(jnp.abs(out - ref))))

    # Also exercise the E-tiled (streamed-decoder) path on a wider head.
    E2 = 300
    params2 = dict(params,
                   dec_w=jax.random.normal(ks[6], (E2, H), jnp.float32) * 0.05,
                   dec_b=jnp.zeros((E2,), jnp.float32))
    prepared2 = prepare_tec_head_params(params2, compute_dtype=jnp.float32)
    out2 = lecbert_tec_head(features, prepared2, eps=eps, force_e_tiles=True)
    jax.block_until_ready(out2)
    ref2 = _reference(features, params2, eps=eps)
    assert out2.shape == (B, S, E2), out2.shape
    assert jnp.allclose(out2, ref2, atol=1e-4, rtol=1e-4), (
        float(jnp.max(jnp.abs(out2 - ref2))))

    print("KERNEL_OK")
</pallas_src>

<mosaic_0001>
module attributes {stable_mosaic.version = 11 : i64} {
  func.func @_tec_head_fused_kernel(%arg0: i32, %arg1: memref<8x128xf32, #tpu.memory_space<vmem>>, %arg2: memref<128x128xf32, #tpu.memory_space<vmem>>, %arg3: memref<1x128xf32, #tpu.memory_space<vmem>>, %arg4: memref<128x128xf32, #tpu.memory_space<vmem>>, %arg5: memref<1x128xf32, #tpu.memory_space<vmem>>, %arg6: memref<8x128xf32, #tpu.memory_space<vmem>>) attributes {dimension_semantics = [#tpu.dimension_semantics<parallel>], iteration_bounds = array<i64: 2>, scalar_prefetch = 0 : i64, scratch_operands = 0 : i64, tpu.core_type = #tpu.core_type<tc>, window_params = [{transform_indices = @transform_0, window_bounds = array<i64: 8, 128>}, {pipeline_mode = #tpu.pipeline_mode<synchronous>, transform_indices = @transform_1, window_bounds = array<i64: 128, 128>}, {pipeline_mode = #tpu.pipeline_mode<synchronous>, transform_indices = @transform_2, window_bounds = array<i64: 1, 128>}, {pipeline_mode = #tpu.pipeline_mode<synchronous>, transform_indices = @transform_3, window_bounds = array<i64: 128, 128>}, {pipeline_mode = #tpu.pipeline_mode<synchronous>, transform_indices = @transform_4, window_bounds = array<i64: 1, 128>}, {transform_indices = @transform_5, window_bounds = array<i64: 8, 128>}]} {
    %c0 = arith.constant 0 : index
    %c0_0 = arith.constant 0 : index
    %0 = vector.load %arg1[%c0, %c0_0] : memref<8x128xf32, #tpu.memory_space<vmem>>, vector<8x128xf32>
    %c0_1 = arith.constant 0 : index
    %c0_2 = arith.constant 0 : index
    %1 = vector.load %arg2[%c0_1, %c0_2] : memref<128x128xf32, #tpu.memory_space<vmem>>, vector<128x128xf32>
    %c0_3 = arith.constant 0 : index
    %c0_4 = arith.constant 0 : index
    %2 = vector.load %arg3[%c0_3, %c0_4] : memref<1x128xf32, #tpu.memory_space<vmem>>, vector<1x128xf32>
    %cst = arith.constant dense<0.000000e+00> : vector<8x128xf32>
    %3 = tpu.matmul %0, %1, %cst {dimension_numbers = #tpu.dot_dimension_numbers<[1], [0], [0], [1], [0, 0, 1, 1], [], []>} : vector<8x128xf32>, vector<128x128xf32>, vector<8x128xf32> -> vector<8x128xf32>
    %4 = vector.broadcast %2 : vector<1x128xf32> to vector<8x128xf32>
    %5 = arith.addf %3, %4 : vector<8x128xf32>
    %cst_5 = arith.constant 5.000000e-01 : f32
    %6 = vector.broadcast %cst_5 : f32 to vector<8x128xf32>
    %7 = arith.mulf %6, %5 : vector<8x128xf32>
    %cst_6 = arith.constant 0.707106769 : f32
    %8 = vector.broadcast %cst_6 : f32 to vector<8x128xf32>
    %9 = arith.mulf %5, %8 : vector<8x128xf32>
    %10 = math.erf %9 : vector<8x128xf32>
    %cst_7 = arith.constant 1.000000e+00 : f32
    %11 = vector.broadcast %cst_7 : f32 to vector<8x128xf32>
    %12 = arith.addf %11, %10 : vector<8x128xf32>
    %13 = arith.mulf %7, %12 : vector<8x128xf32>
    %cst_8 = arith.constant dense<0.000000e+00> : vector<8xf32>
    %14 = vector.multi_reduction <add>, %13, %cst_8 [1] : vector<8x128xf32> to vector<8xf32>
    %15 = vector.shape_cast %14 : vector<8xf32> to vector<8x1xf32>
    %16 = arith.mulf %13, %13 : vector<8x128xf32>
    %cst_9 = arith.constant dense<0.000000e+00> : vector<8xf32>
    %17 = vector.multi_reduction <add>, %16, %cst_9 [1] : vector<8x128xf32> to vector<8xf32>
    %18 = vector.shape_cast %17 : vector<8xf32> to vector<8x1xf32>
    %cst_10 = arith.constant 3.125000e-02 : f32
    %19 = vector.broadcast %cst_10 : f32 to vector<8x1xf32>
    %20 = arith.mulf %15, %19 : vector<8x1xf32>
    %cst_11 = arith.constant 3.125000e-02 : f32
    %21 = vector.broadcast %cst_11 : f32 to vector<8x1xf32>
    %22 = arith.mulf %18, %21 : vector<8x1xf32>
    %23 = arith.mulf %20, %20 : vector<8x1xf32>
    %24 = arith.subf %22, %23 : vector<8x1xf32>
    %cst_12 = arith.constant 0.000000e+00 : f32
    %25 = vector.broadcast %cst_12 : f32 to vector<8x1xf32>
    %26 = arith.maximumf %24, %25 : vector<8x1xf32>
    %27 = vector.broadcast %20 : vector<8x1xf32> to vector<8x128xf32>
    %28 = arith.subf %13, %27 : vector<8x128xf32>
    %cst_13 = arith.constant 9.99999996E-13 : f32
    %29 = vector.broadcast %cst_13 : f32 to vector<8x1xf32>
    %30 = arith.addf %26, %29 : vector<8x1xf32>
    %31 = math.rsqrt %30 : vector<8x1xf32>
    %32 = vector.broadcast %31 : vector<8x1xf32> to vector<8x128xf32>
    %33 = arith.mulf %28, %32 : vector<8x128xf32>
    %c0_14 = arith.constant 0 : index
    %c0_15 = arith.constant 0 : index
    %34 = vector.load %arg4[%c0_14, %c0_15] : memref<128x128xf32, #tpu.memory_space<vmem>>, vector<128x128xf32>
    %cst_16 = arith.constant dense<0.000000e+00> : vector<8x128xf32>
    %35 = tpu.matmul %33, %34, %cst_16 {dimension_numbers = #tpu.dot_dimension_numbers<[1], [0], [0], [1], [0, 0, 1, 1], [], []>} : vector<8x128xf32>, vector<128x128xf32>, vector<8x128xf32> -> vector<8x128xf32>
    %c0_17 = arith.constant 0 : index
    %c0_18 = arith.constant 0 : index
    %36 = vector.load %arg5[%c0_17, %c0_18] : memref<1x128xf32, #tpu.memory_space<vmem>>, vector<1x128xf32>
    %37 = vector.broadcast %36 : vector<1x128xf32> to vector<8x128xf32>
    %38 = arith.addf %35, %37 : vector<8x128xf32>
    %c0_19 = arith.constant 0 : index
    %c0_20 = arith.constant 0 : index
    %39 = vector.load %arg6[%c0_19, %c0_20] : memref<8x128xf32, #tpu.memory_space<vmem>>, vector<8x128xf32>
    tpu.vector_store %arg6[%c0_19, %c0_20], %38 {strides = array<i32>} : memref<8x128xf32, #tpu.memory_space<vmem>>, vector<8x128xf32>,
    return
  }
  func.func @transform_0(%arg0: i32) -> (i32, i32) {
    %c0_i32 = arith.constant 0 : i32
    %c0_i32_0 = arith.constant 0 : i32
    return %arg0, %c0_i32 : i32, i32
  }
  func.func @transform_1(%arg0: i32) -> (i32, i32) {
    %c0_i32 = arith.constant 0 : i32
    %c0_i32_0 = arith.constant 0 : i32
    %c0_i32_1 = arith.constant 0 : i32
    return %c0_i32, %c0_i32_0 : i32, i32
  }
  func.func @transform_2(%arg0: i32) -> (i32, i32) {
    %c0_i32 = arith.constant 0 : i32
    %c0_i32_0 = arith.constant 0 : i32
    %c0_i32_1 = arith.constant 0 : i32
    return %c0_i32, %c0_i32_0 : i32, i32
  }
  func.func @transform_3(%arg0: i32) -> (i32, i32) {
    %c0_i32 = arith.constant 0 : i32
    %c0_i32_0 = arith.constant 0 : i32
    %c0_i32_1 = arith.constant 0 : i32
    return %c0_i32, %c0_i32_0 : i32, i32
  }
  func.func @transform_4(%arg0: i32) -> (i32, i32) {
    %c0_i32 = arith.constant 0 : i32
    %c0_i32_0 = arith.constant 0 : i32
    %c0_i32_1 = arith.constant 0 : i32
    return %c0_i32, %c0_i32_0 : i32, i32
  }
  func.func @transform_5(%arg0: i32) -> (i32, i32) {
    %c0_i32 = arith.constant 0 : i32
    %c0_i32_0 = arith.constant 0 : i32
    return %arg0, %c0_i32 : i32, i32
  }
}

module attributes {stable_mosaic.version = 11 : i64} {
  func.func @_tec_head_fused_kernel(%arg0: i32, %arg1: memref<8x128xf32, #tpu.memory_space<vmem>>, %arg2: memref<128x128xf32, #tpu.memory_space<vmem>>, %arg3: memref<1x128xf32, #tpu.memory_space<vmem>>, %arg4: memref<128x128xf32, #tpu.memory_space<vmem>>, %arg5: memref<1x128xf32, #tpu.memory_space<vmem>>, %arg6: memref<8x128xf32, #tpu.memory_space<vmem>>) attributes {dimension_semantics = [#tpu.dimension_semantics<parallel>], iteration_bounds = array<i64: 2>, scalar_prefetch = 0 : i64, scratch_operands = 0 : i64, tpu.core_type = #tpu.core_type<tc>, window_params = [{transform_indices = @transform_0, window_bounds = array<i64: 8, 128>}, {pipeline_mode = #tpu.pipeline_mode<synchronous>, transform_indices = @transform_1, window_bounds = array<i64: 128, 128>}, {pipeline_mode = #tpu.pipeline_mode<synchronous>, transform_indices = @transform_2, window_bounds = array<i64: 1, 128>}, {pipeline_mode = #tpu.pipeline_mode<synchronous>, transform_indices = @transform_3, window_bounds = array<i64: 128, 128>}, {pipeline_mode = #tpu.pipeline_mode<synchronous>, transform_indices = @transform_4, window_bounds = array<i64: 1, 128>}, {transform_indices = @transform_5, window_bounds = array<i64: 8, 128>}]} {
    %c0 = arith.constant 0 : index
    %c0_0 = arith.constant 0 : index
    %0 = vector.load %arg1[%c0, %c0_0] : memref<8x128xf32, #tpu.memory_space<vmem>>, vector<8x128xf32>
    %c0_1 = arith.constant 0 : index
    %c0_2 = arith.constant 0 : index
    %1 = vector.load %arg2[%c0_1, %c0_2] : memref<128x128xf32, #tpu.memory_space<vmem>>, vector<128x128xf32>
    %c0_3 = arith.constant 0 : index
    %c0_4 = arith.constant 0 : index
    %2 = vector.load %arg3[%c0_3, %c0_4] : memref<1x128xf32, #tpu.memory_space<vmem>>, vector<1x128xf32>
    %cst = arith.constant dense<0.000000e+00> : vector<8x128xf32>
    %3 = tpu.matmul %0, %1, %cst {dimension_numbers = #tpu.dot_dimension_numbers<[1], [0], [0], [1], [0, 0, 1, 1], [], []>} : vector<8x128xf32>, vector<128x128xf32>, vector<8x128xf32> -> vector<8x128xf32>
    %4 = vector.broadcast %2 : vector<1x128xf32> to vector<8x128xf32>
    %5 = arith.addf %3, %4 : vector<8x128xf32>
    %cst_5 = arith.constant 5.000000e-01 : f32
    %6 = vector.broadcast %cst_5 : f32 to vector<8x128xf32>
    %7 = arith.mulf %6, %5 : vector<8x128xf32>
    %cst_6 = arith.constant 0.707106769 : f32
    %8 = vector.broadcast %cst_6 : f32 to vector<8x128xf32>
    %9 = arith.mulf %5, %8 : vector<8x128xf32>
    %10 = math.erf %9 : vector<8x128xf32>
    %cst_7 = arith.constant 1.000000e+00 : f32
    %11 = vector.broadcast %cst_7 : f32 to vector<8x128xf32>
    %12 = arith.addf %11, %10 : vector<8x128xf32>
    %13 = arith.mulf %7, %12 : vector<8x128xf32>
    %cst_8 = arith.constant dense<0.000000e+00> : vector<8xf32>
    %14 = vector.multi_reduction <add>, %13, %cst_8 [1] : vector<8x128xf32> to vector<8xf32>
    %15 = vector.shape_cast %14 : vector<8xf32> to vector<8x1xf32>
    %16 = arith.mulf %13, %13 : vector<8x128xf32>
    %cst_9 = arith.constant dense<0.000000e+00> : vector<8xf32>
    %17 = vector.multi_reduction <add>, %16, %cst_9 [1] : vector<8x128xf32> to vector<8xf32>
    %18 = vector.shape_cast %17 : vector<8xf32> to vector<8x1xf32>
    %cst_10 = arith.constant 3.125000e-02 : f32
    %19 = vector.broadcast %cst_10 : f32 to vector<8x1xf32>
    %20 = arith.mulf %15, %19 : vector<8x1xf32>
    %cst_11 = arith.constant 3.125000e-02 : f32
    %21 = vector.broadcast %cst_11 : f32 to vector<8x1xf32>
    %22 = arith.mulf %18, %21 : vector<8x1xf32>
    %23 = arith.mulf %20, %20 : vector<8x1xf32>
    %24 = arith.subf %22, %23 : vector<8x1xf32>
    %cst_12 = arith.constant 0.000000e+00 : f32
    %25 = vector.broadcast %cst_12 : f32 to vector<8x1xf32>
    %26 = arith.maximumf %24, %25 : vector<8x1xf32>
    %27 = vector.broadcast %20 : vector<8x1xf32> to vector<8x128xf32>
    %28 = arith.subf %13, %27 : vector<8x128xf32>
    %cst_13 = arith.constant 9.99999996E-13 : f32
    %29 = vector.broadcast %cst_13 : f32 to vector<8x1xf32>
    %30 = arith.addf %26, %29 : vector<8x1xf32>
    %31 = math.rsqrt %30 : vector<8x1xf32>
    %32 = vector.broadcast %31 : vector<8x1xf32> to vector<8x128xf32>
    %33 = arith.mulf %28, %32 : vector<8x128xf32>
    %c0_14 = arith.constant 0 : index
    %c0_15 = arith.constant 0 : index
    %34 = vector.load %arg4[%c0_14, %c0_15] : memref<128x128xf32, #tpu.memory_space<vmem>>, vector<128x128xf32>
    %cst_16 = arith.constant dense<0.000000e+00> : vector<8x128xf32>
    %35 = tpu.matmul %33, %34, %cst_16 {dimension_numbers = #tpu.dot_dimension_numbers<[1], [0], [0], [1], [0, 0, 1, 1], [], []>} : vector<8x128xf32>, vector<128x128xf32>, vector<8x128xf32> -> vector<8x128xf32>
    %c0_17 = arith.constant 0 : index
    %c0_18 = arith.constant 0 : index
    %36 = vector.load %arg5[%c0_17, %c0_18] : memref<1x128xf32, #tpu.memory_space<vmem>>, vector<1x128xf32>
    %37 = vector.broadcast %36 : vector<1x128xf32> to vector<8x128xf32>
    %38 = arith.addf %35, %37 : vector<8x128xf32>
    %c0_19 = arith.constant 0 : index
    %c0_20 = arith.constant 0 : index
    %39 = vector.load %arg6[%c0_19, %c0_20] : memref<8x128xf32, #tpu.memory_space<vmem>>, vector<8x128xf32>
    tpu.vector_store %arg6[%c0_19, %c0_20], %38 {strides = array<i32>} : memref<8x128xf32, #tpu.memory_space<vmem>>, vector<8x128xf32>,
    return
  }
  func.func @transform_0(%arg0: i32) -> (i32, i32) {
    %c0_i32 = arith.constant 0 : i32
    %c0_i32_0 = arith.constant 0 : i32
    return %arg0, %c0_i32 : i32, i32
  }
  func.func @transform_1(%arg0: i32) -> (i32, i32) {
    %c0_i32 = arith.constant 0 : i32
    %c0_i32_0 = arith.constant 0 : i32
    %c0_i32_1 = arith.constant 0 : i32
    return %c0_i32, %c0_i32_0 : i32, i32
  }
  func.func @transform_2(%arg0: i32) -> (i32, i32) {
    %c0_i32 = arith.constant 0 : i32
    %c0_i32_0 = arith.constant 0 : i32
    %c0_i32_1 = arith.constant 0 : i32
    return %c0_i32, %c0_i32_0 : i32, i32
  }
  func.func @transform_3(%arg0: i32) -> (i32, i32) {
    %c0_i32 = arith.constant 0 : i32
    %c0_i32_0 = arith.constant 0 : i32
    %c0_i32_1 = arith.constant 0 : i32
    return %c0_i32, %c0_i32_0 : i32, i32
  }
  func.func @transform_4(%arg0: i32) -> (i32, i32) {
    %c0_i32 = arith.constant 0 : i32
    %c0_i32_0 = arith.constant 0 : i32
    %c0_i32_1 = arith.constant 0 : i32
    return %c0_i32, %c0_i32_0 : i32, i32
  }
  func.func @transform_5(%arg0: i32) -> (i32, i32) {
    %c0_i32 = arith.constant 0 : i32
    %c0_i32_0 = arith.constant 0 : i32
    return %arg0, %c0_i32 : i32, i32
  }
}

</mosaic_0001>

<bundles_post_ra>
// kernel: tpu_custom_call.1
= control target key start
LH: loop header
LB: loop body
LE: loop exit
PB: predicated region body
PF: predicated region fallthrough
CT: control target
= control target key end

     0   :  { %10 = vsyncpa [#allocation3], 0  ;;  %s975_s0 = inlined_call_operand.hbm [shape: f32[16,128], index: 0, kind: input, shape index: {}]   ;;  %s976_s1 = inlined_call_operand.hbm [shape: f32[128,128], index: 1, kind: input, shape index: {}]   ;;  %s977_s2 = inlined_call_operand.vmem [shape: f32[1,128], index: 2, kind: input, shape index: {}]   ;;  %s978_s3 = inlined_call_operand.hbm [shape: f32[128,128], index: 3, kind: input, shape index: {}]   ;;  %s979_s4 = inlined_call_operand.vmem [shape: f32[1,128], index: 4, kind: input, shape index: {}]   ;;  %s980_s5 = inlined_call_operand.hbm [shape: f32[16,128], index: 5, kind: output, shape index: {}]  }
   0x1   :  { %12 = vsyncpa [#allocation3 + $0x1], 0 }
   0x2   :  { %13 = vsyncpa [#allocation6], 0 }
   0x3   :  { %14 = vsyncpa [#allocation4], 0 }
   0x4   :  { %16 = vsyncpa [#allocation4 + $0x1], 0  ;;  %s817_s18 = smov 0   ;;  %s819_s19 = smov 0  }
   0x5   :  { %s821_s20 = smov 0   ;;  %s823_s21 = smov 0  }
   0x6 LB: > { %s174_s24 = sshll.u32 %s976_s1, 4  ;;  %s841_s25 = sadd.s32 4294967295, %s781_s21   ;;  %s781_s21 = sphi %s823_s21, %s991_s21   ;;  %s777_s20 = sphi %s821_s20, %s990_s20   ;;  %s773_s19 = sphi %s819_s19, %s989_s19   ;;  %s769_s18 = sphi %s817_s18, %s988_s18   ;;  %s175_s24 = int_to_ptr.hbm [resolvable:$true] %s174_s24 }
   0x7   : > { %p530_p0 = scmp.ge.s32.totalorder %s781_s21, 1  ;;  %p43_p1 = scmp.eq.s32.totalorder %s841_s25, 0 }
   0x8   : > { %p163_p2 = scmp.lt.s32.totalorder %s781_s21, 3  ;;  %s783_s27 = smov [#allocation5]  }
   0x9   : > { %s176_s28 = sshll.u32 %s783_s27, 4  ;;  %s191_s6 = sshll.u32 %s978_s3, 4  ;;  %s177_s28 = int_to_ptr.vmem [resolvable:$true] %s176_s28  ;;  %s192_s6 = int_to_ptr.hbm [resolvable:$true] %s191_s6 }
   0xa   : > { %p846_p3 = pnand %p530_p0, %p163_p2  ;;  %s784_s7 = smov [#allocation7]  }
   0xb   : > { %s193_s8 = sshll.u32 %s784_s7, 4  ;;  %s785_s9 = smov 128   ;;  %s194_s8 = int_to_ptr.vmem [resolvable:$true] %s193_s8 }
   0xc   : > { %p558_p4 = pneg %p846_p3  ;;  %s786_s10 = smov 8  }
   0xd   : > { %s529_s11 = sadd.s32 4294967294, %s781_s21   ;;  %s860_s12 = sadd.s32 1, %s781_s21  }
   0xe   : > { %p559_p6 = pnand %p558_p4, %p43_p1  ;;  %s26_s13 = ssub.s32 %s781_s21, %s860_s12 }
   0xf   : > { %s29_s14 = sadd.s32 1, %s777_s20  ;;  %p27_p7 = scmp.eq.s32.totalorder %s26_s13, 0 }
  0x10   : > { %561 = dma.hbm_to_vmem [thread:$0]  (!%p559_p6), %s175_s24, 2048, %s177_s28, [#allocation6], %s785_s9, %s785_s9, %s786_s10  }
  0x11   : > { %564 = dma.hbm_to_vmem [thread:$0]  (!%p559_p6), %s192_s6, 2048, %s194_s8, [#allocation6], %s785_s9, %s785_s9, %s786_s10  }
  0x12   : > { %p36_p8 = scmp.ne.s32.totalorder %s777_s20, %s773_s19  ;;  %p37_p9 = scmp.eq.s32.totalorder %s781_s21, 0 }
  0x13   : > { %p42_p10 = scmp.ne.s32.totalorder %s773_s19, %s769_s18  ;;  %p150_p13 = scmp.eq.s32.totalorder %s841_s25, 1 }
  0x14   : > { %s871_s15 = scalar_select %p27_p7, %s777_s20, %s29_s14  }
  0x15   : > { %p873_p11 = por %p37_p9, %p36_p8  ;;  %p879_p12 = por %p43_p1, %p42_p10 }
  0x16   : > { %p156_p0 = scmp.eq.s32.totalorder %s529_s11, 1  ;;  %p575_p2 = scmp.lt.s32.totalorder %s781_s21, 2 }
  0x17   : > { %s210_s22 = sand.u32 1, %s777_s20   ;;  %p886_p4 = por %p150_p13, %p36_p8 }
  0x18   : > { %p890_p6 = por %p156_p0, %p42_p10  ;;  %s534_s27 = sshll.u32 %s210_s22, 3 }
  0x19   : > { %s535_s28 = sshll.u32 %s781_s21, 3  ;;  %s214_s7 = scalar_lea.vmem [#allocation2], %s534_s27 }
  0x1a   : > { %s218_s6 = scalar_lea.hbm %s975_s0, %s535_s28  ;;  %s222_s8 = sshll.u32 %s214_s7, 4  ;;  %s223_s8 = int_to_ptr.vmem [resolvable:$true] %s222_s8 }
  0x1b   : > { %s220_s9 = sshll.u32 %s218_s6, 4  ;;  %p900_p7 = pnand %p575_p2, %p873_p11  ;;  %s221_s9 = int_to_ptr.hbm [resolvable:$true] %s220_s9 }
  0x1c   : > { %s211_s11 = scalar_lea.sflag [#allocation3], %s210_s22  ;;  %s681_s13 = sshra.s32 %s221_s9, 4  ;;  %s682_s13 = int_to_ptr.hbm [resolvable:$true] %s681_s13 }
  0x1d   : > { %s683_s14 = scalar_lea.hbm %s682_s13, 8  ;;  %p685_p9 = pneg %p900_p7 }
  0x1e   : > { %p684_p8 = scmp.ne.s32.totalorder %s682_s13, %s683_s14  ;;  %s688_s29 = scalar_lea.hbm %s975_s0, 16 }
  0x1f   : > { %p689_p11 = scmp.lt.s32.totalorder %s682_s13, %s975_s0  ;;  %p690_p0 = scmp.lt.s32.totalorder %s688_s29, %s683_s14 }
  0x20   : > { %p686_p10 = pnand %p685_p9, %p684_p8 }
  0x21   : > { %p691_p2 = por %p690_p0, %p689_p11 }
  0x22   : > { %p687_p13 = pneg %p686_p10 }
  0x24   : > { %p692_p5 = pnand %p691_p2, %p687_p13 }
  0x26   : > { %695 = shalt.err (!%p692_p5)
}
  0x27   : > { %568 = dma.hbm_to_vmem [thread:$0]  (!%p900_p7), %s221_s9, 128, %s223_s8, %s211_s11  }
  0x28   : > { %231 = sbr.rel (%p846_p3) target bundleno = 542 (0x21e), region = 40  ;;  %s917_s22 = sand.u32 (!%p846_p3), 1, %s773_s19  }
  0x29   : > { %s537_s6 = sshll.u32 (!%p846_p3), %s917_s22, 3  ;;  %s234_s7 = scalar_lea.sflag (!%p846_p3), [#allocation3], %s917_s22 }
  0x2a   : > { %s923_s13 = scalar_lea.vmem (!%p846_p3), [#allocation2], %s537_s6 }
  0x2d   : > { %756 = dma.done.wait (%p879_p12), %s234_s7, 128  }
  0x2e   : > { %758 = vsyncadd (%p879_p12), %s234_s7, 4294967168 }
  0x2f   : > { %760 = dma.done.wait (%p43_p1), [#allocation6], 4096  }
  0x30   : > { %762 = vsyncadd (%p43_p1), [#allocation6], 4294963200  ;;  %v291_v0 = vld [vmem:[#allocation5 + $0x78] sm:$0xff]  ;;  %v290_v1 = vld [vmem:[#allocation5 + $0x70] sm:$0xff]  ;;  %s543_s8 = sshll.u32 %s841_s25, 3  ;;  %s274_s28 = scalar_lea.vmem [#allocation8], %s537_s6 }
  0x31   : > { %296 = vmatpush.msra.mxu0 %v291_v0  ;;  %v289_v2 = vld [vmem:[#allocation5 + $0x68] sm:$0xff]  ;;  %v288_v3 = vld [vmem:[#allocation5 + $0x60] sm:$0xff]  ;;  %v287_v4 = vld [vmem:[#allocation5 + $0x58] sm:$0xff]  ;;  %s435_s11 = scalar_lea.hbm %s980_s5, %s543_s8  ;;  %s437_s29 = sshll.u32 %s274_s28, 4  ;;  %s438_s29 = int_to_ptr.vmem [resolvable:$true] %s437_s29 }
  0x32   : > { %v286_v5 = vld [vmem:[#allocation5 + $0x50] sm:$0xff]  ;;  %v285_v6 = vld [vmem:[#allocation5 + $0x48] sm:$0xff]  ;;  %v284_v7 = vld [vmem:[#allocation5 + $0x40] sm:$0xff]  ;;  %s439_s30 = sshll.u32 %s435_s11, 4  ;;  %s425_s16 = scalar_lea.sflag [#allocation4], %s917_s22  ;;  %s440_s30 = int_to_ptr.hbm [resolvable:$true] %s439_s30 }
  0x33   : > { %297 = vmatpush.msra.mxu0 %v290_v1  ;;  %v283_v8 = vld [vmem:[#allocation5 + $0x38] sm:$0xff]  ;;  %v282_v9 = vld [vmem:[#allocation5 + $0x30] sm:$0xff]  ;;  %v281_v10 = vld [vmem:[#allocation5 + $0x28] sm:$0xff]  ;;  %s725_s25 = sshra.s32 %s440_s30, 4  ;;  %s731_s17 = scalar_lea.hbm %s980_s5, 16  ;;  %s726_s25 = int_to_ptr.hbm [resolvable:$true] %s725_s25 }
  0x34   : > { %v280_v11 = vld [vmem:[#allocation5 + $0x20] sm:$0xff]  ;;  %v279_v12 = vld [vmem:[#allocation5 + $0x18] sm:$0xff]  ;;  %v278_v13 = vld [vmem:[#allocation5 + $0x10] sm:$0xff]  ;;  %s727_s7 = scalar_lea.hbm %s726_s25, 8  ;;  %p732_p12 = scmp.lt.s32.totalorder %s726_s25, %s980_s5 }
  0x35   : > { %298 = vmatpush.msra.mxu0 %v289_v2  ;;  %v277_v14 = vld [vmem:[#allocation5 + $0x8] sm:$0xff]  ;;  %v276_v15 = vld [vmem:[#allocation5] sm:$0xff]  ;;  %v275_v16 = vld [vmem:[%s923_s13] sm:$0xff]  ;;  %p728_p1 = scmp.ne.s32.totalorder %s726_s25, %s727_s7  ;;  %p733_p7 = scmp.lt.s32.totalorder %s731_s17, %s727_s7 }
  0x36   : > { %v615_v17 = vld [vmem:[%s977_s2] ss:$0 sm:$0xff]  ;;  %v398_v60 = vld [vmem:[#allocation7 + $0x78] sm:$0xff]  ;;  %v396_v62 = vld [vmem:[#allocation7 + $0x68] sm:$0xff] }
  0x37   : > { %299 = vmatpush.msra.mxu0 %v288_v3  ;;  %v397_v61 = vld [vmem:[#allocation7 + $0x70] sm:$0xff]  ;;  %403 = vmatpush.msra.mxu1 %v398_v60  ;;  %v395_v63 = vld [vmem:[#allocation7 + $0x60] sm:$0xff]  ;;  %v394_v0 = vld [vmem:[#allocation7 + $0x58] sm:$0xff]  ;;  %p729_p3 = pnand %p728_p1, %p886_p4  ;;  %p734_p8 = por %p733_p7, %p732_p12 }
  0x38   : > { %v393_v1 = vld [vmem:[#allocation7 + $0x50] sm:$0xff]  ;;  %v392_v2 = vld [vmem:[#allocation7 + $0x48] sm:$0xff]  ;;  %v391_v3 = vld [vmem:[#allocation7 + $0x40] sm:$0xff] }
  0x39   : > { %300 = vmatpush.msra.mxu0 %v287_v4  ;;  %404 = vmatpush.msra.mxu1 %v397_v61  ;;  %v390_v4 = vld [vmem:[#allocation7 + $0x38] sm:$0xff]  ;;  %p730_p5 = pneg %p729_p3 }
  0x3b   : > { %301 = vmatpush.msra.mxu0 %v286_v5  ;;  %405 = vmatpush.msra.mxu1 %v396_v62  ;;  %v389_v5 = vld [vmem:[#allocation7 + $0x30] sm:$0xff]  ;;  %p735_p9 = pnand %p734_p8, %p730_p5 }
  0x3d   : > { %302 = vmatpush.msra.mxu0 %v285_v6  ;;  %406 = vmatpush.msra.mxu1 %v395_v63  ;;  %v388_v6 = vld [vmem:[#allocation7 + $0x28] sm:$0xff] }
  0x3f   : > { %303 = vmatpush.msra.mxu0 %v284_v7  ;;  %407 = vmatpush.msra.mxu1 %v394_v0  ;;  %v387_v7 = vld [vmem:[#allocation7 + $0x20] sm:$0xff] }
  0x41   : > { %304 = vmatpush.msra.mxu0 %v283_v8  ;;  %408 = vmatpush.msra.mxu1 %v393_v1  ;;  %v386_v8 = vld [vmem:[#allocation7 + $0x18] sm:$0xff] }
  0x43   : > { %305 = vmatpush.msra.mxu0 %v282_v9  ;;  %409 = vmatpush.msra.mxu1 %v392_v2  ;;  %v385_v9 = vld [vmem:[#allocation7 + $0x10] sm:$0xff] }
  0x45   : > { %306 = vmatpush.msra.mxu0 %v281_v10  ;;  %410 = vmatpush.msra.mxu1 %v391_v3 }
  0x47   : > { %307 = vmatpush.msra.mxu0 %v280_v11  ;;  %411 = vmatpush.msra.mxu1 %v390_v4  ;;  %v384_v11 = vld [vmem:[#allocation7 + $0x8] sm:$0xff] }
  0x49   : > { %308 = vmatpush.msra.mxu0 %v279_v12  ;;  %412 = vmatpush.msra.mxu1 %v389_v5  ;;  %v383_v12 = vld [vmem:[#allocation7] sm:$0xff] }
  0x4b   : > { %309 = vmatpush.msra.mxu0 %v278_v13  ;;  %413 = vmatpush.msra.mxu1 %v388_v6 }
  0x4d   : > { %310 = vmatpush.msra.mxu0 %v277_v14  ;;  %414 = vmatpush.msra.mxu1 %v387_v7 }
  0x4f   : > { %311 = vmatpush.msra.mxu0 %v276_v15  ;;  %415 = vmatpush.msra.mxu1 %v386_v8 }
  0x50   : > { %312 = vmatmul.f32.vlgmr.msra.gmra.mxu0 %v275_v16 }
  0x51   : > { %416 = vmatpush.msra.mxu1 %v385_v9 }
  0x53   : > { %417 = vmatpush.msra.mxu1 %v384_v11 }
  0x55   : > { %418 = vmatpush.msra.mxu1 %v383_v12 }
  0xcd   : > { %v313_v18 = vpop.f32.mrf.mxu0 }
  0xce   : > { %v314_v19 = vadd.f32 %v615_v17, %v313_v18 }
  0xd0   : > { %v317_v20 = vmul.f32 0.70710677, %v314_v19  ;;  %v316_v56 = vmul.f32 0.5, %v314_v19 }
  0xd2   : > { %v318_v21 = vmul.f32 %v317_v20, %v317_v20 }
  0xd4   : > { %v319_v22 = vmin.f32 %v318_v21, 16.0 }
  0xd6   : > { %v320_v23 = vmul.f32 2.1237322e-06, %v319_v22  ;;  %v331_v24 = vmul.f32 3.8918573e-05, %v319_v22 }
  0xd8   : > { %v321_v25 = vadd.f32 0.00028619796, %v320_v23  ;;  %v332_v26 = vadd.f32 0.001143296, %v331_v24 }
  0xda   : > { %v322_v27 = vmul.f32 %v321_v25, %v319_v22  ;;  %v333_v28 = vmul.f32 %v332_v26, %v319_v22 }
  0xdc   : > { %v334_v29 = vadd.f32 0.014752088, %v333_v28  ;;  %v323_v30 = vadd.f32 0.0036580483, %v322_v27 }
  0xde   : > { %v335_v31 = vmul.f32 %v334_v29, %v319_v22  ;;  %v324_v33 = vmul.f32 %v323_v30, %v319_v22  ;;  %v616_v29 = vld [vmem:[%s979_s4] ss:$0 sm:$0xff] }
  0xe0   : > { %v336_v32 = vadd.f32 0.112945676, %v335_v31  ;;  %v325_v36 = vadd.f32 0.05243302, %v324_v33 }
  0xe2   : > { %v337_v34 = vmul.f32 %v336_v32, %v319_v22  ;;  %v326_v39 = vmul.f32 %v325_v36, %v319_v22 }
  0xe4   : > { %v338_v35 = vadd.f32 0.4994258, %v337_v34  ;;  %v327_v40 = vadd.f32 0.18741608, %v326_v39 }
  0xe6   : > { %v339_v37 = vmul.f32 %v338_v35, %v319_v22  ;;  %v328_v42 = vmul.f32 %v327_v40, %v319_v22 }
  0xe8   : > { %v340_v38 = vadd.f32 1.0, %v339_v37  ;;  %v329_v46 = vadd.f32 1.1283791, %v328_v42 }
  0xea   : > { %617 = vrcp.f32 %v340_v38  ;;  %v352_v45 = vand.u32 2147483648, %v340_v38  ;;  %v350_v48 = vand.u32 2147483647, %v340_v38  ;;  %vm346_vm1 = vweird.f32 %v340_v38 }
  0xeb   : > { %v330_v51 = vmul.f32 %v329_v46, %v317_v20 }
  0xec   : > { %v353_v50 = vor.u32 1.1754944e-38, %v352_v45  ;;  %vm351_vm3 = vcmp.eq.f32.partialorder %v350_v48, 8.507059e+37 }
  0xf0   : > { %v618_v41 = vpop.eup %617 }
  0xf1   : > { %v342_v43 = vmul.f32 %v618_v41, %v340_v38  ;;  %vm347_vm0 = vweird.f32 %v618_v41 }
  0xf2   : > { %vm348_vm2 = vmor %vm346_vm1, %vm347_vm0 }
  0xf3   : > { %v343_v44 = vsub.f32 1.0, %v342_v43 }
  0xf5   : > { %v344_v47 = vmul.f32 %v618_v41, %v343_v44 }
  0xf7   : > { %v345_v49 = vadd.f32 %v618_v41, %v344_v47 }
  0xf9   : > { %v349_v52 = vsel %vm348_vm2, %v618_v41, %v345_v49 }
  0xfa   : > { %v354_v53 = vsel %vm351_vm3, %v353_v50, %v349_v52 }
  0xfb   : > { %v355_v54 = vmul.f32 %v354_v53, %v330_v51 }
  0xfd   : > { %v541_v55 = vclamps-f32 %v355_v54, 1.0 }
  0xff   : > { %v358_v57 = vadd.f32 1.0, %v541_v55 }
 0x101   : > { %v359_v58 = vmul.f32 %v358_v57, %v316_v56 }
 0x103   : > { %360 = vadd.xlane.f32.xlu0 %v359_v58  ;;  %v362_v59 = vmul.f32 %v359_v58, %v359_v58 }
 0x10b   : > { %363 = vadd.xlane.f32.xlu0 %v362_v59 }
 0x176   : > { %v361_v10 = vpop.xlane.xlu0 %360 }
 0x177   : > { %v365_v13 = vmul.f32 0.03125, %v361_v10 }
 0x179   : > { %v367_v15 = vmul.f32 %v365_v13, %v365_v13  ;;  %v370_v26 = vsub.f32 %v359_v58, %v365_v13 }
 0x17e   : > { %v364_v14 = vpop.xlane.xlu0 %363 }
 0x17f   : > { %v366_v16 = vmul.f32 0.03125, %v364_v14 }
 0x181   : > { %v368_v17 = vsub.f32 %v366_v16, %v367_v15 }
 0x183   : > { %v369_v18 = vmax.f32 %v368_v17, 0.0 }
 0x185   : > { %v371_v19 = vadd.f32 1e-12, %v369_v18 }
 0x187   : > { %619 = vrsqrt.f32 %v371_v19  ;;  %vm378_vm5 = vweird.f32 %v371_v19 }
 0x18d   : > { %v620_v20 = vpop.eup %619 }
 0x18e   : > { %v373_v21 = vmul.f32 %v620_v20, %v371_v19  ;;  %vm379_vm4 = vweird.f32 %v620_v20 }
 0x18f   : > { %vm380_vm6 = vmor %vm378_vm5, %vm379_vm4 }
 0x190   : > { %v374_v22 = vmul.f32 %v620_v20, %v373_v21 }
 0x192   : > { %v375_v23 = vmul.f32 0.5, %v374_v22 }
 0x194   : > { %v376_v24 = vsub.f32 1.5, %v375_v23 }
 0x196   : > { %v377_v25 = vmul.f32 %v620_v20, %v376_v24 }
 0x198   : > { %v381_v27 = vsel %vm380_vm6, %v620_v20, %v377_v25 }
 0x199   : > { %v382_v28 = vmul.f32 %v381_v27, %v370_v26 }
 0x19b   : > { %419 = vmatmul.f32.vlgmr.msra.gmra.mxu1 %v382_v28 }
 0x218   : > { %v420_v30 = vpop.f32.mrf.mxu1 }
 0x219   : > { %v421_v31 = vadd.f32 %v616_v29, %v420_v30 }
 0x21b   : > { %423 = vst [vmem:[%s274_s28] sm:$0xff] %v421_v31 }
 0x21c   : > { %738 = shalt.err (!%p735_p9)
}
 0x21d   : > { %556 = dma.vmem_to_hbm [thread:$0]  (%p886_p4), %s438_s29, 128, %s440_s30, %s425_s16  }
 0x21e PF: > { %s451_s22 = sand.u32 1, %s769_s18   ;;  %p987_p10 = scmp.ge.s32.totalorder %s781_s21, 2 }
 0x21f   : > { %s452_s9 = scalar_lea.sflag [#allocation4], %s451_s22 }
 0x220   : > { %p570_p13 = pnand %p987_p10, %p890_p6 }
 0x222   : > { %p571_p11 = pneg %p570_p13 }
 0x224   : > { %764 = dma.done.wait (%p571_p11), %s452_s9, 128  }
 0x225   : > { %766 = vsyncadd (%p571_p11), %s452_s9, 4294967168  ;;  %p19_p0 = scmp.ge.s32.totalorder %s860_s12, 4   ;;  %s988_s18 = smov %s773_s19 }
 0x226   : > { %s989_s19 = smov %s777_s20  ;;  %s990_s20 = smov %s871_s15 }
 0x227   : > { %s991_s21 = smov %s860_s12  ;;  %21 = sbr.rel (!%p19_p0) target bundleno = 6 (0x6), region = 93 }
 0x22c   :  { %458 = vsyncpa [#allocation3], 1 }
 0x22d   :  { %460 = vsyncpa [#allocation3 + $0x1], 1 }
 0x22e   :  { %461 = vsyncpa [#allocation6], 1 }
 0x22f   :  { %462 = vsyncpa [#allocation4], 1 }
 0x230   :  { %464 = vsyncpa [#allocation4 + $0x1], 1 }

// kernel: tpu_custom_call.1
= control target key start
LH: loop header
LB: loop body
LE: loop exit
PB: predicated region body
PF: predicated region fallthrough
CT: control target
= control target key end

     0   :  { %10 = vsyncpa [#allocation3], 0  ;;  %s975_s0 = inlined_call_operand.hbm [shape: f32[16,128], index: 0, kind: input, shape index: {}]   ;;  %s976_s1 = inlined_call_operand.hbm [shape: f32[128,128], index: 1, kind: input, shape index: {}]   ;;  %s977_s2 = inlined_call_operand.vmem [shape: f32[1,128], index: 2, kind: input, shape index: {}]   ;;  %s978_s3 = inlined_call_operand.hbm [shape: f32[128,128], index: 3, kind: input, shape index: {}]   ;;  %s979_s4 = inlined_call_operand.vmem [shape: f32[1,128], index: 4, kind: input, shape index: {}]   ;;  %s980_s5 = inlined_call_operand.hbm [shape: f32[16,128], index: 5, kind: output, shape index: {}]  }
   0x1   :  { %12 = vsyncpa [#allocation3 + $0x1], 0 }
   0x2   :  { %13 = vsyncpa [#allocation6], 0 }
   0x3   :  { %14 = vsyncpa [#allocation4], 0 }
   0x4   :  { %16 = vsyncpa [#allocation4 + $0x1], 0  ;;  %s817_s18 = smov 0   ;;  %s819_s19 = smov 0  }
   0x5   :  { %s821_s20 = smov 0   ;;  %s823_s21 = smov 0  }
   0x6 LB: > { %s174_s24 = sshll.u32 %s976_s1, 4  ;;  %s841_s25 = sadd.s32 4294967295, %s781_s21   ;;  %s781_s21 = sphi %s823_s21, %s991_s21   ;;  %s777_s20 = sphi %s821_s20, %s990_s20   ;;  %s773_s19 = sphi %s819_s19, %s989_s19   ;;  %s769_s18 = sphi %s817_s18, %s988_s18   ;;  %s175_s24 = int_to_ptr.hbm [resolvable:$true] %s174_s24 }
   0x7   : > { %p530_p0 = scmp.ge.s32.totalorder %s781_s21, 1  ;;  %p43_p1 = scmp.eq.s32.totalorder %s841_s25, 0 }
   0x8   : > { %p163_p2 = scmp.lt.s32.totalorder %s781_s21, 3  ;;  %s783_s27 = smov [#allocation5]  }
   0x9   : > { %s176_s28 = sshll.u32 %s783_s27, 4  ;;  %s191_s6 = sshll.u32 %s978_s3, 4  ;;  %s177_s28 = int_to_ptr.vmem [resolvable:$true] %s176_s28  ;;  %s192_s6 = int_to_ptr.hbm [resolvable:$true] %s191_s6 }
   0xa   : > { %p846_p3 = pnand %p530_p0, %p163_p2  ;;  %s784_s7 = smov [#allocation7]  }
   0xb   : > { %s193_s8 = sshll.u32 %s784_s7, 4  ;;  %s785_s9 = smov 128   ;;  %s194_s8 = int_to_ptr.vmem [resolvable:$true] %s193_s8 }
   0xc   : > { %p558_p4 = pneg %p846_p3  ;;  %s786_s10 = smov 8  }
   0xd   : > { %s529_s11 = sadd.s32 4294967294, %s781_s21   ;;  %s860_s12 = sadd.s32 1, %s781_s21  }
   0xe   : > { %p559_p6 = pnand %p558_p4, %p43_p1  ;;  %s26_s13 = ssub.s32 %s781_s21, %s860_s12 }
   0xf   : > { %s29_s14 = sadd.s32 1, %s777_s20  ;;  %p27_p7 = scmp.eq.s32.totalorder %s26_s13, 0 }
  0x10   : > { %561 = dma.hbm_to_vmem [thread:$0]  (!%p559_p6), %s175_s24, 2048, %s177_s28, [#allocation6], %s785_s9, %s785_s9, %s786_s10  }
  0x11   : > { %564 = dma.hbm_to_vmem [thread:$0]  (!%p559_p6), %s192_s6, 2048, %s194_s8, [#allocation6], %s785_s9, %s785_s9, %s786_s10  }
  0x12   : > { %p36_p8 = scmp.ne.s32.totalorder %s777_s20, %s773_s19  ;;  %p37_p9 = scmp.eq.s32.totalorder %s781_s21, 0 }
  0x13   : > { %p42_p10 = scmp.ne.s32.totalorder %s773_s19, %s769_s18  ;;  %p150_p13 = scmp.eq.s32.totalorder %s841_s25, 1 }
  0x14   : > { %s871_s15 = scalar_select %p27_p7, %s777_s20, %s29_s14  }
  0x15   : > { %p873_p11 = por %p37_p9, %p36_p8  ;;  %p879_p12 = por %p43_p1, %p42_p10 }
  0x16   : > { %p156_p0 = scmp.eq.s32.totalorder %s529_s11, 1  ;;  %p575_p2 = scmp.lt.s32.totalorder %s781_s21, 2 }
  0x17   : > { %s210_s22 = sand.u32 1, %s777_s20   ;;  %p886_p4 = por %p150_p13, %p36_p8 }
  0x18   : > { %p890_p6 = por %p156_p0, %p42_p10  ;;  %s534_s27 = sshll.u32 %s210_s22, 3 }
  0x19   : > { %s535_s28 = sshll.u32 %s781_s21, 3  ;;  %s214_s7 = scalar_lea.vmem [#allocation2], %s534_s27 }
  0x1a   : > { %s218_s6 = scalar_lea.hbm %s975_s0, %s535_s28  ;;  %s222_s8 = sshll.u32 %s214_s7, 4  ;;  %s223_s8 = int_to_ptr.vmem [resolvable:$true] %s222_s8 }
  0x1b   : > { %s220_s9 = sshll.u32 %s218_s6, 4  ;;  %p900_p7 = pnand %p575_p2, %p873_p11  ;;  %s221_s9 = int_to_ptr.hbm [resolvable:$true] %s220_s9 }
  0x1c   : > { %s211_s11 = scalar_lea.sflag [#allocation3], %s210_s22  ;;  %s681_s13 = sshra.s32 %s221_s9, 4  ;;  %s682_s13 = int_to_ptr.hbm [resolvable:$true] %s681_s13 }
  0x1d   : > { %s683_s14 = scalar_lea.hbm %s682_s13, 8  ;;  %p685_p9 = pneg %p900_p7 }
  0x1e   : > { %p684_p8 = scmp.ne.s32.totalorder %s682_s13, %s683_s14  ;;  %s688_s29 = scalar_lea.hbm %s975_s0, 16 }
  0x1f   : > { %p689_p11 = scmp.lt.s32.totalorder %s682_s13, %s975_s0  ;;  %p690_p0 = scmp.lt.s32.totalorder %s688_s29, %s683_s14 }
  0x20   : > { %p686_p10 = pnand %p685_p9, %p684_p8 }
  0x21   : > { %p691_p2 = por %p690_p0, %p689_p11 }
  0x22   : > { %p687_p13 = pneg %p686_p10 }
  0x24   : > { %p692_p5 = pnand %p691_p2, %p687_p13 }
  0x26   : > { %695 = shalt.err (!%p692_p5)
}
  0x27   : > { %568 = dma.hbm_to_vmem [thread:$0]  (!%p900_p7), %s221_s9, 128, %s223_s8, %s211_s11  }
  0x28   : > { %231 = sbr.rel (%p846_p3) target bundleno = 542 (0x21e), region = 40  ;;  %s917_s22 = sand.u32 (!%p846_p3), 1, %s773_s19  }
  0x29   : > { %s537_s6 = sshll.u32 (!%p846_p3), %s917_s22, 3  ;;  %s234_s7 = scalar_lea.sflag (!%p846_p3), [#allocation3], %s917_s22 }
  0x2a   : > { %s923_s13 = scalar_lea.vmem (!%p846_p3), [#allocation2], %s537_s6 }
  0x2d   : > { %756 = dma.done.wait (%p879_p12), %s234_s7, 128  }
  0x2e   : > { %758 = vsyncadd (%p879_p12), %s234_s7, 4294967168 }
  0x2f   : > { %760 = dma.done.wait (%p43_p1), [#allocation6], 4096  }
  0x30   : > { %762 = vsyncadd (%p43_p1), [#allocation6], 4294963200  ;;  %v291_v0 = vld [vmem:[#allocation5 + $0x78] sm:$0xff]  ;;  %v290_v1 = vld [vmem:[#allocation5 + $0x70] sm:$0xff]  ;;  %s543_s8 = sshll.u32 %s841_s25, 3  ;;  %s274_s28 = scalar_lea.vmem [#allocation8], %s537_s6 }
  0x31   : > { %296 = vmatpush.msra.mxu0 %v291_v0  ;;  %v289_v2 = vld [vmem:[#allocation5 + $0x68] sm:$0xff]  ;;  %v288_v3 = vld [vmem:[#allocation5 + $0x60] sm:$0xff]  ;;  %v287_v4 = vld [vmem:[#allocation5 + $0x58] sm:$0xff]  ;;  %s435_s11 = scalar_lea.hbm %s980_s5, %s543_s8  ;;  %s437_s29 = sshll.u32 %s274_s28, 4  ;;  %s438_s29 = int_to_ptr.vmem [resolvable:$true] %s437_s29 }
  0x32   : > { %v286_v5 = vld [vmem:[#allocation5 + $0x50] sm:$0xff]  ;;  %v285_v6 = vld [vmem:[#allocation5 + $0x48] sm:$0xff]  ;;  %v284_v7 = vld [vmem:[#allocation5 + $0x40] sm:$0xff]  ;;  %s439_s30 = sshll.u32 %s435_s11, 4  ;;  %s425_s16 = scalar_lea.sflag [#allocation4], %s917_s22  ;;  %s440_s30 = int_to_ptr.hbm [resolvable:$true] %s439_s30 }
  0x33   : > { %297 = vmatpush.msra.mxu0 %v290_v1  ;;  %v283_v8 = vld [vmem:[#allocation5 + $0x38] sm:$0xff]  ;;  %v282_v9 = vld [vmem:[#allocation5 + $0x30] sm:$0xff]  ;;  %v281_v10 = vld [vmem:[#allocation5 + $0x28] sm:$0xff]  ;;  %s725_s25 = sshra.s32 %s440_s30, 4  ;;  %s731_s17 = scalar_lea.hbm %s980_s5, 16  ;;  %s726_s25 = int_to_ptr.hbm [resolvable:$true] %s725_s25 }
  0x34   : > { %v280_v11 = vld [vmem:[#allocation5 + $0x20] sm:$0xff]  ;;  %v279_v12 = vld [vmem:[#allocation5 + $0x18] sm:$0xff]  ;;  %v278_v13 = vld [vmem:[#allocation5 + $0x10] sm:$0xff]  ;;  %s727_s7 = scalar_lea.hbm %s726_s25, 8  ;;  %p732_p12 = scmp.lt.s32.totalorder %s726_s25, %s980_s5 }
  0x35   : > { %298 = vmatpush.msra.mxu0 %v289_v2  ;;  %v277_v14 = vld [vmem:[#allocation5 + $0x8] sm:$0xff]  ;;  %v276_v15 = vld [vmem:[#allocation5] sm:$0xff]  ;;  %v275_v16 = vld [vmem:[%s923_s13] sm:$0xff]  ;;  %p728_p1 = scmp.ne.s32.totalorder %s726_s25, %s727_s7  ;;  %p733_p7 = scmp.lt.s32.totalorder %s731_s17, %s727_s7 }
  0x36   : > { %v615_v17 = vld [vmem:[%s977_s2] ss:$0 sm:$0xff]  ;;  %v398_v60 = vld [vmem:[#allocation7 + $0x78] sm:$0xff]  ;;  %v396_v62 = vld [vmem:[#allocation7 + $0x68] sm:$0xff] }
  0x37   : > { %299 = vmatpush.msra.mxu0 %v288_v3  ;;  %v397_v61 = vld [vmem:[#allocation7 + $0x70] sm:$0xff]  ;;  %403 = vmatpush.msra.mxu1 %v398_v60  ;;  %v395_v63 = vld [vmem:[#allocation7 + $0x60] sm:$0xff]  ;;  %v394_v0 = vld [vmem:[#allocation7 + $0x58] sm:$0xff]  ;;  %p729_p3 = pnand %p728_p1, %p886_p4  ;;  %p734_p8 = por %p733_p7, %p732_p12 }
  0x38   : > { %v393_v1 = vld [vmem:[#allocation7 + $0x50] sm:$0xff]  ;;  %v392_v2 = vld [vmem:[#allocation7 + $0x48] sm:$0xff]  ;;  %v391_v3 = vld [vmem:[#allocation7 + $0x40] sm:$0xff] }
  0x39   : > { %300 = vmatpush.msra.mxu0 %v287_v4  ;;  %404 = vmatpush.msra.mxu1 %v397_v61  ;;  %v390_v4 = vld [vmem:[#allocation7 + $0x38] sm:$0xff]  ;;  %p730_p5 = pneg %p729_p3 }
  0x3b   : > { %301 = vmatpush.msra.mxu0 %v286_v5  ;;  %405 = vmatpush.msra.mxu1 %v396_v62  ;;  %v389_v5 = vld [vmem:[#allocation7 + $0x30] sm:$0xff]  ;;  %p735_p9 = pnand %p734_p8, %p730_p5 }
  0x3d   : > { %302 = vmatpush.msra.mxu0 %v285_v6  ;;  %406 = vmatpush.msra.mxu1 %v395_v63  ;;  %v388_v6 = vld [vmem:[#allocation7 + $0x28] sm:$0xff] }
  0x3f   : > { %303 = vmatpush.msra.mxu0 %v284_v7  ;;  %407 = vmatpush.msra.mxu1 %v394_v0  ;;  %v387_v7 = vld [vmem:[#allocation7 + $0x20] sm:$0xff] }
  0x41   : > { %304 = vmatpush.msra.mxu0 %v283_v8  ;;  %408 = vmatpush.msra.mxu1 %v393_v1  ;;  %v386_v8 = vld [vmem:[#allocation7 + $0x18] sm:$0xff] }
  0x43   : > { %305 = vmatpush.msra.mxu0 %v282_v9  ;;  %409 = vmatpush.msra.mxu1 %v392_v2  ;;  %v385_v9 = vld [vmem:[#allocation7 + $0x10] sm:$0xff] }
  0x45   : > { %306 = vmatpush.msra.mxu0 %v281_v10  ;;  %410 = vmatpush.msra.mxu1 %v391_v3 }
  0x47   : > { %307 = vmatpush.msra.mxu0 %v280_v11  ;;  %411 = vmatpush.msra.mxu1 %v390_v4  ;;  %v384_v11 = vld [vmem:[#allocation7 + $0x8] sm:$0xff] }
  0x49   : > { %308 = vmatpush.msra.mxu0 %v279_v12  ;;  %412 = vmatpush.msra.mxu1 %v389_v5  ;;  %v383_v12 = vld [vmem:[#allocation7] sm:$0xff] }
  0x4b   : > { %309 = vmatpush.msra.mxu0 %v278_v13  ;;  %413 = vmatpush.msra.mxu1 %v388_v6 }
  0x4d   : > { %310 = vmatpush.msra.mxu0 %v277_v14  ;;  %414 = vmatpush.msra.mxu1 %v387_v7 }
  0x4f   : > { %311 = vmatpush.msra.mxu0 %v276_v15  ;;  %415 = vmatpush.msra.mxu1 %v386_v8 }
  0x50   : > { %312 = vmatmul.f32.vlgmr.msra.gmra.mxu0 %v275_v16 }
  0x51   : > { %416 = vmatpush.msra.mxu1 %v385_v9 }
  0x53   : > { %417 = vmatpush.msra.mxu1 %v384_v11 }
  0x55   : > { %418 = vmatpush.msra.mxu1 %v383_v12 }
  0xcd   : > { %v313_v18 = vpop.f32.mrf.mxu0 }
  0xce   : > { %v314_v19 = vadd.f32 %v615_v17, %v313_v18 }
  0xd0   : > { %v317_v20 = vmul.f32 0.70710677, %v314_v19  ;;  %v316_v56 = vmul.f32 0.5, %v314_v19 }
  0xd2   : > { %v318_v21 = vmul.f32 %v317_v20, %v317_v20 }
  0xd4   : > { %v319_v22 = vmin.f32 %v318_v21, 16.0 }
  0xd6   : > { %v320_v23 = vmul.f32 2.1237322e-06, %v319_v22  ;;  %v331_v24 = vmul.f32 3.8918573e-05, %v319_v22 }
  0xd8   : > { %v321_v25 = vadd.f32 0.00028619796, %v320_v23  ;;  %v332_v26 = vadd.f32 0.001143296, %v331_v24 }
  0xda   : > { %v322_v27 = vmul.f32 %v321_v25, %v319_v22  ;;  %v333_v28 = vmul.f32 %v332_v26, %v319_v22 }
  0xdc   : > { %v334_v29 = vadd.f32 0.014752088, %v333_v28  ;;  %v323_v30 = vadd.f32 0.0036580483, %v322_v27 }
  0xde   : > { %v335_v31 = vmul.f32 %v334_v29, %v319_v22  ;;  %v324_v33 = vmul.f32 %v323_v30, %v319_v22  ;;  %v616_v29 = vld [vmem:[%s979_s4] ss:$0 sm:$0xff] }
  0xe0   : > { %v336_v32 = vadd.f32 0.112945676, %v335_v31  ;;  %v325_v36 = vadd.f32 0.05243302, %v324_v33 }
  0xe2   : > { %v337_v34 = vmul.f32 %v336_v32, %v319_v22  ;;  %v326_v39 = vmul.f32 %v325_v36, %v319_v22 }
  0xe4   : > { %v338_v35 = vadd.f32 0.4994258, %v337_v34  ;;  %v327_v40 = vadd.f32 0.18741608, %v326_v39 }
  0xe6   : > { %v339_v37 = vmul.f32 %v338_v35, %v319_v22  ;;  %v328_v42 = vmul.f32 %v327_v40, %v319_v22 }
  0xe8   : > { %v340_v38 = vadd.f32 1.0, %v339_v37  ;;  %v329_v46 = vadd.f32 1.1283791, %v328_v42 }
  0xea   : > { %617 = vrcp.f32 %v340_v38  ;;  %v352_v45 = vand.u32 2147483648, %v340_v38  ;;  %v350_v48 = vand.u32 2147483647, %v340_v38  ;;  %vm346_vm1 = vweird.f32 %v340_v38 }
  0xeb   : > { %v330_v51 = vmul.f32 %v329_v46, %v317_v20 }
  0xec   : > { %v353_v50 = vor.u32 1.1754944e-38, %v352_v45  ;;  %vm351_vm3 = vcmp.eq.f32.partialorder %v350_v48, 8.507059e+37 }
  0xf0   : > { %v618_v41 = vpop.eup %617 }
  0xf1   : > { %v342_v43 = vmul.f32 %v618_v41, %v340_v38  ;;  %vm347_vm0 = vweird.f32 %v618_v41 }
  0xf2   : > { %vm348_vm2 = vmor %vm346_vm1, %vm347_vm0 }
  0xf3   : > { %v343_v44 = vsub.f32 1.0, %v342_v43 }
  0xf5   : > { %v344_v47 = vmul.f32 %v618_v41, %v343_v44 }
  0xf7   : > { %v345_v49 = vadd.f32 %v618_v41, %v344_v47 }
  0xf9   : > { %v349_v52 = vsel %vm348_vm2, %v618_v41, %v345_v49 }
  0xfa   : > { %v354_v53 = vsel %vm351_vm3, %v353_v50, %v349_v52 }
  0xfb   : > { %v355_v54 = vmul.f32 %v354_v53, %v330_v51 }
  0xfd   : > { %v541_v55 = vclamps-f32 %v355_v54, 1.0 }
  0xff   : > { %v358_v57 = vadd.f32 1.0, %v541_v55 }
 0x101   : > { %v359_v58 = vmul.f32 %v358_v57, %v316_v56 }
 0x103   : > { %360 = vadd.xlane.f32.xlu0 %v359_v58  ;;  %v362_v59 = vmul.f32 %v359_v58, %v359_v58 }
 0x10b   : > { %363 = vadd.xlane.f32.xlu0 %v362_v59 }
 0x176   : > { %v361_v10 = vpop.xlane.xlu0 %360 }
 0x177   : > { %v365_v13 = vmul.f32 0.03125, %v361_v10 }
 0x179   : > { %v367_v15 = vmul.f32 %v365_v13, %v365_v13  ;;  %v370_v26 = vsub.f32 %v359_v58, %v365_v13 }
 0x17e   : > { %v364_v14 = vpop.xlane.xlu0 %363 }
 0x17f   : > { %v366_v16 = vmul.f32 0.03125, %v364_v14 }
 0x181   : > { %v368_v17 = vsub.f32 %v366_v16, %v367_v15 }
 0x183   : > { %v369_v18 = vmax.f32 %v368_v17, 0.0 }
 0x185   : > { %v371_v19 = vadd.f32 1e-12, %v369_v18 }
 0x187   : > { %619 = vrsqrt.f32 %v371_v19  ;;  %vm378_vm5 = vweird.f32 %v371_v19 }
 0x18d   : > { %v620_v20 = vpop.eup %619 }
 0x18e   : > { %v373_v21 = vmul.f32 %v620_v20, %v371_v19  ;;  %vm379_vm4 = vweird.f32 %v620_v20 }
 0x18f   : > { %vm380_vm6 = vmor %vm378_vm5, %vm379_vm4 }
 0x190   : > { %v374_v22 = vmul.f32 %v620_v20, %v373_v21 }
 0x192   : > { %v375_v23 = vmul.f32 0.5, %v374_v22 }
 0x194   : > { %v376_v24 = vsub.f32 1.5, %v375_v23 }
 0x196   : > { %v377_v25 = vmul.f32 %v620_v20, %v376_v24 }
 0x198   : > { %v381_v27 = vsel %vm380_vm6, %v620_v20, %v377_v25 }
 0x199   : > { %v382_v28 = vmul.f32 %v381_v27, %v370_v26 }
 0x19b   : > { %419 = vmatmul.f32.vlgmr.msra.gmra.mxu1 %v382_v28 }
 0x218   : > { %v420_v30 = vpop.f32.mrf.mxu1 }
 0x219   : > { %v421_v31 = vadd.f32 %v616_v29, %v420_v30 }
 0x21b   : > { %423 = vst [vmem:[%s274_s28] sm:$0xff] %v421_v31 }
 0x21c   : > { %738 = shalt.err (!%p735_p9)
}
 0x21d   : > { %556 = dma.vmem_to_hbm [thread:$0]  (%p886_p4), %s438_s29, 128, %s440_s30, %s425_s16  }
 0x21e PF: > { %s451_s22 = sand.u32 1, %s769_s18   ;;  %p987_p10 = scmp.ge.s32.totalorder %s781_s21, 2 }
 0x21f   : > { %s452_s9 = scalar_lea.sflag [#allocation4], %s451_s22 }
 0x220   : > { %p570_p13 = pnand %p987_p10, %p890_p6 }
 0x222   : > { %p571_p11 = pneg %p570_p13 }
 0x224   : > { %764 = dma.done.wait (%p571_p11), %s452_s9, 128  }
 0x225   : > { %766 = vsyncadd (%p571_p11), %s452_s9, 4294967168  ;;  %p19_p0 = scmp.ge.s32.totalorder %s860_s12, 4   ;;  %s988_s18 = smov %s773_s19 }
 0x226   : > { %s989_s19 = smov %s777_s20  ;;  %s990_s20 = smov %s871_s15 }
 0x227   : > { %s991_s21 = smov %s860_s12  ;;  %21 = sbr.rel (!%p19_p0) target bundleno = 6 (0x6), region = 93 }
 0x22c   :  { %458 = vsyncpa [#allocation3], 1 }
 0x22d   :  { %460 = vsyncpa [#allocation3 + $0x1], 1 }
 0x22e   :  { %461 = vsyncpa [#allocation6], 1 }
 0x22f   :  { %462 = vsyncpa [#allocation4], 1 }
 0x230   :  { %464 = vsyncpa [#allocation4 + $0x1], 1 }

</bundles_post_ra>
